<compile_context>
chip_gen: v7x
topology: tpu7x:2x2x1
jax: 0.10.0
libtpu: 0.0.40
codegen_flags: <defaults>
</compile_context>

<pallas_src>
import math

import jax
import jax.numpy as jnp
from jax.experimental import pallas as pl
from jax.experimental.pallas import tpu as pltpu


_LANE_CANDIDATES = (1024, 512, 256, 128)
_MAX_TILE_ROWS = 1024    # 1024 x 1024 f32 = 4 MiB per input per pipeline buffer


def _round_up(x, m):
    return ((x + m - 1) // m) * m


def _num_tensorcores():
    """TensorCores addressable by one pallas_call via megacore 'parallel' axes."""
    try:
        kind = jax.devices()[0].device_kind.lower()
    except Exception:
        return 1
    if "v7" in kind or "v4" in kind or "v5p" in kind:
        return 2
    return 1   # v5e / v6e: single TensorCore per chip


def _make_kernel(tile_rows, lanes, tiles_per_core, valid_rows, needs_mask):
    """Per-tile elementwise math + (8, lanes) partial-sum accumulation."""

    def kernel(x_ref, xh_ref, lv_ref, loss_out, recon_out, lv_out):
        t = pl.program_id(1)

        # ---- init per-core accumulators at the first inner step ------------
        @pl.when(t == 0)
        def _():
            loss_out[...] = jnp.zeros_like(loss_out)
            recon_out[...] = jnp.zeros_like(recon_out)
            lv_out[...] = jnp.zeros_like(lv_out)

        # ---- hot path: VPU/EUP elementwise on a lane-dense tile ------------
        x = x_ref[...].astype(jnp.float32)
        xh = xh_ref[...].astype(jnp.float32)
        lv = lv_ref[...].astype(jnp.float32)

        if needs_mask:
            # Ragged last tile / clamped over-allocated grid step: zero out
            # rows past the true extent BEFORE exp() so no garbage/NaN leaks.
            p = pl.program_id(0)
            row0 = (p * tiles_per_core + t) * tile_rows
            local = jax.lax.broadcasted_iota(jnp.int32, (tile_rows, lanes), 0)
            valid = (local + row0) < valid_rows
            zero = jnp.float32(0.0)
            x = jnp.where(valid, x, zero)
            xh = jnp.where(valid, xh, zero)
            lv = jnp.where(valid, lv, zero)
            # masked rows contribute exactly 0: |0-0|=0, exp(-0)*0=0, lv=0

        recon = jnp.abs(x - xh)                 # |net_in - x_hat|
        loss1 = jnp.exp(-lv) * recon            # exp(-log_var) * recon_loss

        if tile_rows % 8 == 0:
            # Full (8, lanes) accumulators: cross-vreg VPU adds + unmasked
            # full-vreg stores (no per-step XLU sublane collapse).
            g = tile_rows // 8
            loss_out[...] += jnp.sum(loss1.reshape(g, 8, lanes), axis=0)
            recon_out[...] += jnp.sum(recon.reshape(g, 8, lanes), axis=0)
            lv_out[...] += jnp.sum(lv.reshape(g, 8, lanes), axis=0)
        else:
            # Tiny single-tile case (rows < 8 or not a multiple of 8).
            loss_out[0:1, :] += jnp.sum(loss1, axis=0, keepdims=True)
            recon_out[0:1, :] += jnp.sum(recon, axis=0, keepdims=True)
            lv_out[0:1, :] += jnp.sum(lv, axis=0, keepdims=True)

    return kernel


def aeu_loss(net_in, x_hat, log_var, z, beta: float = 0.0,
             grad_pen_weight: float = 0.0, force_cores=None):
    """Pallas implementation of AEULoss.forward (anomaly_score=False path).

    Returns (loss_mean, recon_loss_mean, log_var_mean) as f32 scalars.
    """
    assert net_in.shape == x_hat.shape == log_var.shape
    # TODO(synk): grad_pen_loss needs autograd through the decoder (z -> x_hat);
    # only the default grad_pen_weight == 0 path is supported here.
    assert grad_pen_weight == 0.0, "grad_pen_loss not supported in the Pallas kernel"

    n = math.prod(net_in.shape)

    # Lane-dense layout: largest lane width (>=128) dividing n so the reshape
    # below is a pure bitcast (no padded HBM copies of the inputs).
    lanes = next((c for c in _LANE_CANDIDATES if n % c == 0), None)
    if lanes is None:
        # Rare pathological case (n not a multiple of 128): one minimal pad
        # (< 128 zero elements; zero padding is exact for every term).
        lanes = 128
        padded_n = _round_up(n, lanes)
    else:
        padded_n = n

    rows = padded_n // lanes

    # Sublane granularity of the narrowest input dtype (f32: 8, bf16: 16,
    # fp8/int8: 32) so packed-dtype tiles never force a relayout.
    itemsize = min(jnp.dtype(a.dtype).itemsize for a in (net_in, x_hat, log_var))
    gran = 8 * max(1, 4 // itemsize)

    if rows <= _MAX_TILE_ROWS:
        tile_rows = rows                              # block == full dim (always legal)
    else:
        tile_rows = (_MAX_TILE_ROWS // gran) * gran   # multiple of sublane granularity

    num_tiles = pl.cdiv(rows, tile_rows)
    n_cores = force_cores if force_cores is not None else _num_tensorcores()
    n_cores = max(1, min(n_cores, num_tiles))
    tiles_per_core = pl.cdiv(num_tiles, n_cores)

    clamp_needed = (n_cores * tiles_per_core) != num_tiles
    needs_mask = clamp_needed or (rows % tile_rows != 0)

    def _prep(a):
        flat = a.reshape(-1)
        if padded_n != n:
            flat = jnp.pad(flat, (0, padded_n - n))   # rare path only (see above)
        return flat.reshape(rows, lanes)              # bitcast reshape: no HBM copy

    x2, xh2, lv2 = _prep(net_in), _prep(x_hat), _prep(log_var)

    if clamp_needed:
        # Clamp the over-allocated trailing step(s) of the last core onto the
        # last valid tile: the DMA stays in-bounds, the block index repeats so
        # the pipeline skips the re-fetch, and the in-kernel mask zeroes it.
        def img_index(p, t):
            return (jnp.minimum(p * tiles_per_core + t, num_tiles - 1), 0)
    else:
        def img_index(p, t):
            return (p * tiles_per_core + t, 0)

    img_spec = pl.BlockSpec((tile_rows, lanes), img_index)
    out_spec = pl.BlockSpec((8, lanes), lambda p, t: (p, 0))
    part_shape = jax.ShapeDtypeStruct((n_cores * 8, lanes), jnp.float32)

    kernel = _make_kernel(tile_rows, lanes, tiles_per_core, rows, needs_mask)

    loss_p, recon_p, lv_p = pl.pallas_call(
        kernel,
        out_shape=(part_shape, part_shape, part_shape),
        grid_spec=pltpu.PrefetchScalarGridSpec(
            num_scalar_prefetch=0,
            grid=(n_cores, tiles_per_core),
            in_specs=[img_spec, img_spec, img_spec],
            out_specs=(out_spec, out_spec, out_spec),
        ),
        compiler_params=pltpu.CompilerParams(
            dimension_semantics=("parallel", "arbitrary"),
            # 3 inputs x 4 MiB x 2 buffers = 24 MiB + accumulators; explicit
            # limit required on v5e (16 MiB scoped default), safe under v7x's
            # 64 MiB physical VMEM.
            vmem_limit_bytes=48 * 1024 * 1024,
        ),
    )(x2, xh2, lv2)

    # ---- tiny final reductions + embedding loss, in plain JAX ---------------
    inv_n = jnp.float32(1.0 / n)
    sum_loss1 = jnp.sum(loss_p)
    sum_recon = jnp.sum(recon_p)
    sum_lv = jnp.sum(lv_p)

    embedding_loss = jnp.float32(beta) * jnp.mean(z.astype(jnp.float32) ** 2)

    # loss = loss1 + log_var + embedding_loss (+ grad_penalty == 0)
    # => loss.mean() = mean(loss1) + mean(log_var) + embedding_loss
    loss_mean = sum_loss1 * inv_n + sum_lv * inv_n + embedding_loss
    recon_mean = sum_recon * inv_n
    lv_mean = sum_lv * inv_n
    return loss_mean, recon_mean, lv_mean


def aeu_loss_ref(net_in, x_hat, log_var, z, beta=0.0):
    """Pure-JAX reference matching the PyTorch forward (grad_pen_weight=0)."""
    recon = jnp.abs(net_in - x_hat)
    embedding_loss = beta * jnp.mean(z ** 2)
    loss1 = jnp.exp(-log_var) * recon
    loss = loss1 + log_var + embedding_loss
    return loss.mean(), recon.mean(), log_var.mean()


if __name__ == "__main__":
    root_key = jax.random.PRNGKey(0)

    def check(shape, zshape, beta, key, force_cores=None, rtol=1e-4, atol=1e-5):
        k1, k2, k3, k4 = jax.random.split(key, 4)
        net_in = jax.random.normal(k1, shape, dtype=jnp.float32)
        x_hat = jax.random.normal(k2, shape, dtype=jnp.float32)
        log_var = 0.1 * jax.random.normal(k3, shape, dtype=jnp.float32)
        z = jax.random.normal(k4, zshape, dtype=jnp.float32)

        out = aeu_loss(net_in, x_hat, log_var, z, beta=beta,
                       grad_pen_weight=0.0, force_cores=force_cores)
        out = jax.block_until_ready(out)
        ref = aeu_loss_ref(net_in, x_hat, log_var, z, beta=beta)
        for got, exp in zip(out, ref):
            assert jnp.allclose(got, exp, rtol=rtol, atol=atol), (got, exp)

    k1, k2, k3 = jax.random.split(root_key, 3)

    # Small shape matching the module's typical use: single (2, 1024) tile,
    # no padding, no masking.
    check((2, 4, 16, 16), (2, 32), 0.0, k1)

    # Multi-tile with a ragged last tile (rows=1536, tile_rows=1024):
    # exercises the in-kernel row mask with zero padded HBM traffic.
    check((3, 4, 128, 1024), (3, 32), 0.5, k2)

    # Odd tile count forced onto a 2-core grid (rows=2560 -> 3 tiles over 2
    # cores): exercises the clamped block index + fully-masked trailing step.
    # Runs correctly on single-core chips too ("parallel" just runs serially).
    check((5, 4, 128, 1024), (5, 32), 0.25, k3, force_cores=2)

    print("KERNEL_OK")
</pallas_src>

<mosaic_0001>
module attributes {stable_mosaic.version = 11 : i64} {
  func.func @kernel(%arg0: i32, %arg1: i32, %arg2: memref<2x1024xf32, #tpu.memory_space<vmem>>, %arg3: memref<2x1024xf32, #tpu.memory_space<vmem>>, %arg4: memref<2x1024xf32, #tpu.memory_space<vmem>>, %arg5: memref<8x1024xf32, #tpu.memory_space<vmem>>, %arg6: memref<8x1024xf32, #tpu.memory_space<vmem>>, %arg7: memref<8x1024xf32, #tpu.memory_space<vmem>>) attributes {dimension_semantics = [#tpu.dimension_semantics<parallel>, #tpu.dimension_semantics<arbitrary>], iteration_bounds = array<i64: 1, 1>, scalar_prefetch = 0 : i64, scratch_operands = 0 : i64, tpu.core_type = #tpu.core_type<tc>, window_params = [{transform_indices = @transform_0, window_bounds = array<i64: 2, 1024>}, {transform_indices = @transform_1, window_bounds = array<i64: 2, 1024>}, {transform_indices = @transform_2, window_bounds = array<i64: 2, 1024>}, {transform_indices = @transform_3, window_bounds = array<i64: 8, 1024>}, {transform_indices = @transform_4, window_bounds = array<i64: 8, 1024>}, {transform_indices = @transform_5, window_bounds = array<i64: 8, 1024>}]} {
    %c0_i32 = arith.constant 0 : i32
    %0 = arith.cmpi eq, %arg1, %c0_i32 : i32
    %1 = arith.extui %0 : i1 to i32
    %c0_i32_0 = arith.constant 0 : i32
    %2 = arith.cmpi ne, %1, %c0_i32_0 : i32
    scf.if %2 {
      %cst_21 = arith.constant 0.000000e+00 : f32
      %27 = vector.broadcast %cst_21 : f32 to vector<8x1024xf32>
      %c0_22 = arith.constant 0 : index
      %c0_23 = arith.constant 0 : index
      %28 = vector.load %arg5[%c0_22, %c0_23] : memref<8x1024xf32, #tpu.memory_space<vmem>>, vector<8x1024xf32>
      tpu.vector_store %arg5[%c0_22, %c0_23], %27 {strides = array<i32>} : memref<8x1024xf32, #tpu.memory_space<vmem>>, vector<8x1024xf32>,
      %cst_24 = arith.constant 0.000000e+00 : f32
      %29 = vector.broadcast %cst_24 : f32 to vector<8x1024xf32>
      %c0_25 = arith.constant 0 : index
      %c0_26 = arith.constant 0 : index
      %30 = vector.load %arg6[%c0_25, %c0_26] : memref<8x1024xf32, #tpu.memory_space<vmem>>, vector<8x1024xf32>
      tpu.vector_store %arg6[%c0_25, %c0_26], %29 {strides = array<i32>} : memref<8x1024xf32, #tpu.memory_space<vmem>>, vector<8x1024xf32>,
      %cst_27 = arith.constant 0.000000e+00 : f32
      %31 = vector.broadcast %cst_27 : f32 to vector<8x1024xf32>
      %c0_28 = arith.constant 0 : index
      %c0_29 = arith.constant 0 : index
      %32 = vector.load %arg7[%c0_28, %c0_29] : memref<8x1024xf32, #tpu.memory_space<vmem>>, vector<8x1024xf32>
      tpu.vector_store %arg7[%c0_28, %c0_29], %31 {strides = array<i32>} : memref<8x1024xf32, #tpu.memory_space<vmem>>, vector<8x1024xf32>,
    } else {
    }
    %c0 = arith.constant 0 : index
    %c0_1 = arith.constant 0 : index
    %3 = vector.load %arg2[%c0, %c0_1] : memref<2x1024xf32, #tpu.memory_space<vmem>>, vector<2x1024xf32>
    %c0_2 = arith.constant 0 : index
    %c0_3 = arith.constant 0 : index
    %4 = vector.load %arg3[%c0_2, %c0_3] : memref<2x1024xf32, #tpu.memory_space<vmem>>, vector<2x1024xf32>
    %c0_4 = arith.constant 0 : index
    %c0_5 = arith.constant 0 : index
    %5 = vector.load %arg4[%c0_4, %c0_5] : memref<2x1024xf32, #tpu.memory_space<vmem>>, vector<2x1024xf32>
    %6 = arith.subf %3, %4 : vector<2x1024xf32>
    %7 = math.absf %6 : vector<2x1024xf32>
    %cst = arith.constant 0.000000e+00 : f32
    %8 = vector.broadcast %cst : f32 to vector<2x1024xf32>
    %9 = arith.subf %8, %5 : vector<2x1024xf32>
    %10 = math.exp %9 : vector<2x1024xf32>
    %11 = arith.mulf %10, %7 : vector<2x1024xf32>
    %c0_6 = arith.constant 0 : index
    %c0_7 = arith.constant 0 : index
    %12 = vector.load %arg5[%c0_6, %c0_7] : memref<8x1024xf32, #tpu.memory_space<vmem>>, vector<1x1024xf32>
    %cst_8 = arith.constant dense<0.000000e+00> : vector<1024xf32>
    %13 = vector.multi_reduction <add>, %11, %cst_8 [0] : vector<2x1024xf32> to vector<1024xf32>
    %14 = vector.shape_cast %13 : vector<1024xf32> to vector<1x1024xf32>
    %15 = arith.addf %12, %14 : vector<1x1024xf32>
    %c0_9 = arith.constant 0 : index
    %c0_10 = arith.constant 0 : index
    %16 = vector.load %arg5[%c0_9, %c0_10] : memref<8x1024xf32, #tpu.memory_space<vmem>>, vector<1x1024xf32>
    tpu.vector_store %arg5[%c0_9, %c0_10], %15 {strides = array<i32>} : memref<8x1024xf32, #tpu.memory_space<vmem>>, vector<1x1024xf32>,
    %c0_11 = arith.constant 0 : index
    %c0_12 = arith.constant 0 : index
    %17 = vector.load %arg6[%c0_11, %c0_12] : memref<8x1024xf32, #tpu.memory_space<vmem>>, vector<1x1024xf32>
    %cst_13 = arith.constant dense<0.000000e+00> : vector<1024xf32>
    %18 = vector.multi_reduction <add>, %7, %cst_13 [0] : vector<2x1024xf32> to vector<1024xf32>
    %19 = vector.shape_cast %18 : vector<1024xf32> to vector<1x1024xf32>
    %20 = arith.addf %17, %19 : vector<1x1024xf32>
    %c0_14 = arith.constant 0 : index
    %c0_15 = arith.constant 0 : index
    %21 = vector.load %arg6[%c0_14, %c0_15] : memref<8x1024xf32, #tpu.memory_space<vmem>>, vector<1x1024xf32>
    tpu.vector_store %arg6[%c0_14, %c0_15], %20 {strides = array<i32>} : memref<8x1024xf32, #tpu.memory_space<vmem>>, vector<1x1024xf32>,
    %c0_16 = arith.constant 0 : index
    %c0_17 = arith.constant 0 : index
    %22 = vector.load %arg7[%c0_16, %c0_17] : memref<8x1024xf32, #tpu.memory_space<vmem>>, vector<1x1024xf32>
    %cst_18 = arith.constant dense<0.000000e+00> : vector<1024xf32>
    %23 = vector.multi_reduction <add>, %5, %cst_18 [0] : vector<2x1024xf32> to vector<1024xf32>
    %24 = vector.shape_cast %23 : vector<1024xf32> to vector<1x1024xf32>
    %25 = arith.addf %22, %24 : vector<1x1024xf32>
    %c0_19 = arith.constant 0 : index
    %c0_20 = arith.constant 0 : index
    %26 = vector.load %arg7[%c0_19, %c0_20] : memref<8x1024xf32, #tpu.memory_space<vmem>>, vector<1x1024xf32>
    tpu.vector_store %arg7[%c0_19, %c0_20], %25 {strides = array<i32>} : memref<8x1024xf32, #tpu.memory_space<vmem>>, vector<1x1024xf32>,
    return
  }
  func.func @transform_0(%arg0: i32, %arg1: i32) -> (i32, i32) {
    %c1_i32 = arith.constant 1 : i32
    %0 = arith.muli %arg0, %c1_i32 : i32
    %1 = arith.addi %0, %arg1 : i32
    %c0_i32 = arith.constant 0 : i32
    %c0_i32_0 = arith.constant 0 : i32
    return %1, %c0_i32 : i32, i32
  }
  func.func @transform_1(%arg0: i32, %arg1: i32) -> (i32, i32) {
    %c1_i32 = arith.constant 1 : i32
    %0 = arith.muli %arg0, %c1_i32 : i32
    %1 = arith.addi %0, %arg1 : i32
    %c0_i32 = arith.constant 0 : i32
    %c0_i32_0 = arith.constant 0 : i32
    return %1, %c0_i32 : i32, i32
  }
  func.func @transform_2(%arg0: i32, %arg1: i32) -> (i32, i32) {
    %c1_i32 = arith.constant 1 : i32
    %0 = arith.muli %arg0, %c1_i32 : i32
    %1 = arith.addi %0, %arg1 : i32
    %c0_i32 = arith.constant 0 : i32
    %c0_i32_0 = arith.constant 0 : i32
    return %1, %c0_i32 : i32, i32
  }
  func.func @transform_3(%arg0: i32, %arg1: i32) -> (i32, i32) {
    %c0_i32 = arith.constant 0 : i32
    %c0_i32_0 = arith.constant 0 : i32
    return %arg0, %c0_i32 : i32, i32
  }
  func.func @transform_4(%arg0: i32, %arg1: i32) -> (i32, i32) {
    %c0_i32 = arith.constant 0 : i32
    %c0_i32_0 = arith.constant 0 : i32
    return %arg0, %c0_i32 : i32, i32
  }
  func.func @transform_5(%arg0: i32, %arg1: i32) -> (i32, i32) {
    %c0_i32 = arith.constant 0 : i32
    %c0_i32_0 = arith.constant 0 : i32
    return %arg0, %c0_i32 : i32, i32
  }
}

</mosaic_0001>

<bundles_post_ra>
// kernel: tpu_custom_call.1
= control target key start
LH: loop header
LB: loop body
LE: loop exit
PB: predicated region body
PF: predicated region fallthrough
CT: control target
= control target key end

     0   :  { %11 = vsyncpa [#allocation3], 0  ;;  %s1035_s0 = inlined_call_operand.hbm [shape: f32[2,1024], index: 0, kind: input, shape index: {}]   ;;  %s1036_s1 = inlined_call_operand.hbm [shape: f32[2,1024], index: 1, kind: input, shape index: {}]   ;;  %s1037_s2 = inlined_call_operand.hbm [shape: f32[2,1024], index: 2, kind: input, shape index: {}]   ;;  %s1038_s3 = inlined_call_operand.hbm [shape: f32[8,1024], index: 3, kind: output, shape index: {0}]   ;;  %s1039_s4 = inlined_call_operand.hbm [shape: f32[8,1024], index: 4, kind: output, shape index: {1}]   ;;  %s1040_s5 = inlined_call_operand.hbm [shape: f32[8,1024], index: 5, kind: output, shape index: {2}]  }
   0x1   :  { %12 = vsyncpa [#allocation6], 0 }
   0x2   :  { %13 = vsyncpa [#allocation4], 0 }
   0x3   :  { %14 = vsyncpa [#allocation10], 0  ;;  %s804_s18 = smov [#allocation5]   ;;  %s805_s20 = smov [#allocation2]  }
   0x4   :  { %s39_s19 = sshll.u32 %s804_s18, 4  ;;  %s25_s21 = sshll.u32 %s805_s20, 4  ;;  %s40_s19 = int_to_ptr.vmem [resolvable:$true] %s39_s19  ;;  %s26_s21 = int_to_ptr.vmem [resolvable:$true] %s25_s21 }
   0x5   :  { %s664_s24 = scalar_lea.hbm %s1036_s1, 256 }
   0x6   :  { %p665_p0 = scmp.ne.s32.totalorder %s1036_s1, %s664_s24  ;;  %p668_p1 = scmp.lt.u32.totalorder %s664_s24, %s1036_s1 }
   0x8   :  { %p670_p2 = pnand %p668_p1, %p665_p0 }
   0xa   :  { %673 = shalt.err (!%p670_p2)
}
   0xb   :  { %s674_s29 = scalar_lea.vmem %s40_s19, 256  ;;  %p679_p4 = scmp.lt.s32.totalorder %s40_s19, %s40_s19 }
   0xc   :  { %p675_p3 = scmp.ne.s32.totalorder %s40_s19, %s674_s29  ;;  %p680_p5 = scmp.lt.s32.totalorder %s674_s29, %s674_s29 }
   0xe   :  { %p681_p6 = por %p680_p5, %p679_p4 }
  0x10   :  { %p682_p7 = pnand %p681_p6, %p675_p3 }
  0x12   :  { %685 = shalt.err (!%p682_p7)
}
  0x13   :  { %42 = dma.hbm_to_vmem [thread:$0]  %s1036_s1, 256, %s40_s19, [#allocation6]  }
  0x14   :  { %s686_s9 = scalar_lea.hbm %s1035_s0, 256 }
  0x15   :  { %p687_p8 = scmp.ne.s32.totalorder %s1035_s0, %s686_s9  ;;  %p690_p9 = scmp.lt.u32.totalorder %s686_s9, %s1035_s0 }
  0x17   :  { %p692_p10 = pnand %p690_p9, %p687_p8 }
  0x19   :  { %695 = shalt.err (!%p692_p10)
}
  0x1a   :  { %s696_s14 = scalar_lea.vmem %s26_s21, 256  ;;  %p701_p12 = scmp.lt.s32.totalorder %s26_s21, %s26_s21 }
  0x1b   :  { %p697_p11 = scmp.ne.s32.totalorder %s26_s21, %s696_s14  ;;  %p702_p13 = scmp.lt.s32.totalorder %s696_s14, %s696_s14 }
  0x1d   :  { %p703_p0 = por %p702_p13, %p701_p12 }
  0x1f   :  { %p704_p1 = pnand %p703_p0, %p697_p11 }
  0x21   :  { %707 = shalt.err (!%p704_p1)
}
  0x22   :  { %28 = dma.hbm_to_vmem [thread:$0]  %s1035_s0, 256, %s26_s21, [#allocation3]  }
  0x23   :  { %s806_s16 = smov [#allocation7]   ;;  %s708_s20 = scalar_lea.hbm %s1037_s2, 256 }
  0x24   :  { %s53_s17 = sshll.u32 %s806_s16, 4  ;;  %p709_p2 = scmp.ne.s32.totalorder %s1037_s2, %s708_s20  ;;  %s54_s17 = int_to_ptr.vmem [resolvable:$true] %s53_s17 }
  0x25   :  { %p712_p3 = scmp.lt.u32.totalorder %s708_s20, %s1037_s2 }
  0x27   :  { %p714_p4 = pnand %p712_p3, %p709_p2 }
  0x29   :  { %717 = shalt.err (!%p714_p4)
}
  0x2a   :  { %s718_s26 = scalar_lea.vmem %s54_s17, 256  ;;  %p723_p6 = scmp.lt.s32.totalorder %s54_s17, %s54_s17 }
  0x2b   :  { %p719_p5 = scmp.ne.s32.totalorder %s54_s17, %s718_s26  ;;  %p724_p7 = scmp.lt.s32.totalorder %s718_s26, %s718_s26 }
  0x2d   :  { %p725_p8 = por %p724_p7, %p723_p6 }
  0x2f   :  { %p726_p9 = pnand %p725_p8, %p719_p5 }
  0x31   :  { %729 = shalt.err (!%p726_p9)
}
  0x32   :  { %56 = dma.hbm_to_vmem [thread:$0]  %s1037_s2, 256, %s54_s17, [#allocation6]  }
  0x33   :  { %796 = dma.done.wait [#allocation3], 256  }
  0x34   :  { %797 = vsyncadd [#allocation3], 4294967040 }
  0x35   :  { %798 = dma.done.wait [#allocation6], 512  }
  0x36   :  { %799 = vsyncadd [#allocation6], 4294966784  ;;  %v124_v0 = vlaneseq  ;;  %v807_v1 = vmov 0.0   ;;  %v808_v2 = vmov 1983009808   ;;  %v97_v10 = vld [vmem:[#allocation2] sm:$0xff] }
  0x37   :  { %81 = vst [vmem:[#allocation9] sm:$0xff] %v807_v1  ;;  %73 = vst [vmem:[#allocation8] sm:$0xff] %v807_v1  ;;  %v122_v3 = vunpack.c.l.s4 %v808_v2  ;;  %v809_v5 = vmov 1966171168   ;;  %v98_v11 = vld [vmem:[#allocation2 + $0x8] sm:$0xff]  ;;  %v99_v12 = vld [vmem:[#allocation5] sm:$0xff] }
  0x38   :  { %74 = vst [vmem:[#allocation8 + $0x8] sm:$0xff] %v807_v1  ;;  %75 = vst [vmem:[#allocation8 + $0x10] sm:$0xff] %v807_v1  ;;  %v125_v4 = vshrl.u32 %v124_v0, 7  ;;  %v232_v6 = vunpack.c.l.s4 %v809_v5  ;;  %v100_v13 = vld [vmem:[#allocation5 + $0x8] sm:$0xff]  ;;  %v103_v14 = vsub.f32 %v97_v10, %v99_v12  ;;  %vm162_vm0 = vcmask 1041408   ;;  %v101_v16 = vld [vmem:[#allocation7] sm:$0xff] }
  0x39   :  { %76 = vst [vmem:[#allocation8 + $0x18] sm:$0xff] %v807_v1  ;;  %77 = vst [vmem:[#allocation8 + $0x20] sm:$0xff] %v807_v1  ;;  %v123_v7 = vunpack.c.0.s8 %v122_v3  ;;  %v104_v17 = vsub.f32 %v98_v11, %v100_v13  ;;  %v885_v19 = vld [vmem:[#allocation7 + $0x8] sm:$0xff]  ;;  %v107_v20 = vsub.f32 0.0, %v101_v16  ;;  %v449_v21 = vcombine.high %v101_v16, %v101_v16  ;;  %s810_s2 = smov [#allocation9]  }
  0x3a   :  { %78 = vst [vmem:[#allocation8 + $0x28] sm:$0xff] %v807_v1  ;;  %79 = vst [vmem:[#allocation8 + $0x30] sm:$0xff] %v807_v1  ;;  %v233_v9 = vunpack.c.0.s8 %v232_v6  ;;  %v890_v23 = vand.u32 2147483647, %v103_v14  ;;  %v108_v26 = vsub.f32 0.0, %v885_v19  ;;  %v466_v30 = vcombine.high %v885_v19, %v885_v19  ;;  %s624_s27 = sshll.u32 %s810_s2, 4  ;;  %s625_s27 = int_to_ptr.vmem [resolvable:$true] %s624_s27 }
  0x3b   :  { %80 = vst [vmem:[#allocation8 + $0x38] sm:$0xff] %v807_v1  ;;  %82 = vst [vmem:[#allocation9 + $0x8] sm:$0xff] %v807_v1  ;;  %v879_v8 = vsub.s32 %v123_v7, %v125_v4  ;;  %v897_v27 = vand.u32 2147483647, %v104_v17  ;;  %v109_v28 = vmul.f32 1.442695, %v107_v20  ;;  %p735_p11 = scmp.lt.s32.totalorder %s625_s27, %s625_s27 }
  0x3c   :  { %83 = vst [vmem:[#allocation9 + $0x10] sm:$0xff] %v807_v1  ;;  %84 = vst [vmem:[#allocation9 + $0x18] sm:$0xff] %v807_v1  ;;  %v892_v24 = vsub.s32 %v233_v9, %v125_v4  ;;  %v285_v31 = vcombine.high %v890_v23, %v890_v23  ;;  %v111_v33 = vmul.f32 1.442695, %v108_v26  ;;  %s730_s28 = scalar_lea.vmem %s625_s27, 1024 }
  0x3d   :  { %85 = vst [vmem:[#allocation9 + $0x20] sm:$0xff] %v807_v1  ;;  %86 = vst [vmem:[#allocation9 + $0x28] sm:$0xff] %v807_v1  ;;  %v888_v22 = vrot.slane %v101_v16, %v879_v8  ;;  %v900_v29 = vrot.slane %v449_v21, %v879_v8  ;;  %v292_v32 = vrot.slane %v890_v23, %v879_v8  ;;  %660 = vpow2.f32 %v109_v28  ;;  %p731_p10 = scmp.ne.s32.totalorder %s625_s27, %s730_s28  ;;  %p736_p12 = scmp.lt.s32.totalorder %s730_s28, %s730_s28 }
  0x3e   :  { %87 = vst [vmem:[#allocation9 + $0x30] sm:$0xff] %v807_v1  ;;  %88 = vst [vmem:[#allocation9 + $0x38] sm:$0xff] %v807_v1  ;;  %v302_v35 = vcombine.high %v897_v27, %v897_v27  ;;  %v309_v36 = vrot.slane %v897_v27, %v879_v8  ;;  %v916_v37 = vrot.slane %v885_v19, %v879_v8  ;;  %662 = vpow2.f32 %v111_v33 }
  0x3f   :  { %89 = vst [vmem:[#allocation11] sm:$0xff] %v807_v1  ;;  %90 = vst [vmem:[#allocation11 + $0x8] sm:$0xff] %v807_v1  ;;  %v464_v34 = vcombine.high %v888_v22, %v888_v22  ;;  %v299_v38 = vrot.slane %v285_v31, %v879_v8  ;;  %v300_v39 = vcombine.high %v292_v32, %v292_v32  ;;  %v327_v40 = vsel %vm162_vm0, %v292_v32, 0.0  ;;  %p737_p13 = por %p736_p12, %p735_p11 }
  0x40   :  { %91 = vst [vmem:[#allocation11 + $0x10] sm:$0xff] %v807_v1  ;;  %92 = vst [vmem:[#allocation11 + $0x18] sm:$0xff] %v807_v1  ;;  %v316_v41 = vrot.slane %v302_v35, %v879_v8  ;;  %v317_v42 = vcombine.high %v309_v36, %v309_v36  ;;  %v328_v43 = vrot.slane %v327_v40, 4  ;;  %v355_v44 = vsel %vm162_vm0, %v309_v36, 0.0 }
  0x41   :  { %93 = vst [vmem:[#allocation11 + $0x20] sm:$0xff] %v807_v1  ;;  %94 = vst [vmem:[#allocation11 + $0x28] sm:$0xff] %v807_v1  ;;  %v301_v45 = vcombine.high %v299_v38, %v299_v38  ;;  %v334_v46 = vsel %vm162_vm0, %v300_v39, 0.0  ;;  %v341_v47 = vsel %vm162_vm0, %v299_v38, 0.0  ;;  %v356_v48 = vrot.slane %v355_v44, 4  ;;  %p738_p0 = pnand %p737_p13, %p731_p10 }
  0x42   :  { %95 = vst [vmem:[#allocation11 + $0x30] sm:$0xff] %v807_v1  ;;  %96 = vst [vmem:[#allocation11 + $0x38] sm:$0xff] %v807_v1  ;;  %v318_v49 = vcombine.high %v316_v41, %v316_v41  ;;  %v329_v50 = vadd.f32 %v328_v43, %v327_v40  ;;  %v335_v51 = vrot.slane %v334_v46, 4  ;;  %v342_v52 = vrot.slane %v341_v47, 4 }
  0x43   :  { %v881_v15 = vld [vmem:[#allocation9] ss:$8 sm:$0xf]  ;;  %v348_v53 = vsel %vm162_vm0, %v301_v45, 0.0  ;;  %v357_v54 = vadd.f32 %v356_v48, %v355_v44  ;;  %v362_v55 = vsel %vm162_vm0, %v317_v42, 0.0  ;;  %v369_v56 = vsel %vm162_vm0, %v316_v41, 0.0 }
  0x44   :  { %v330_v57 = vrot.slane %v329_v50, 2  ;;  %v336_v58 = vadd.f32 %v335_v51, %v334_v46  ;;  %v343_v59 = vadd.f32 %v342_v52, %v341_v47  ;;  %v349_v60 = vrot.slane %v348_v53, 4 }
  0x45   :  { %v883_v18 = vld [vmem:[#allocation9] ss:$8 sm:$0xf0]  ;;  %v358_v61 = vrot.slane %v357_v54, 2  ;;  %v363_v62 = vrot.slane %v362_v55, 4  ;;  %v370_v63 = vrot.slane %v369_v56, 4 }
  0x46   :  { %v282_v25 = vor.u32 %v883_v18, %v881_v15  ;;  %v376_v0 = vsel %vm162_vm0, %v318_v49, 0.0  ;;  %v331_v1 = vadd.f32 %v330_v57, %v329_v50  ;;  %v337_v2 = vrot.slane %v336_v58, 2 }
  0x47   :  { %v344_v3 = vrot.slane %v343_v59, 2  ;;  %v350_v4 = vadd.f32 %v349_v60, %v348_v53  ;;  %v359_v5 = vadd.f32 %v358_v61, %v357_v54  ;;  %v364_v6 = vadd.f32 %v363_v62, %v362_v55  ;;  %v661_v10 = vpop.eup %660 }
  0x48   :  { %v371_v7 = vadd.f32 %v370_v63, %v369_v56  ;;  %v377_v9 = vrot.slane %v376_v0, 4  ;;  %v332_v11 = vrot.slane %v331_v1, 1  ;;  %v338_v12 = vadd.f32 %v337_v2, %v336_v58  ;;  %v663_v16 = vpop.eup %662 }
  0x49   :  { %v345_v13 = vadd.f32 %v344_v3, %v343_v59  ;;  %v351_v14 = vrot.slane %v350_v4, 2  ;;  %v360_v17 = vrot.slane %v359_v5, 1  ;;  %v365_v20 = vrot.slane %v364_v6, 2 }
  0x4a   :  { %v372_v21 = vrot.slane %v371_v7, 2  ;;  %v378_v26 = vadd.f32 %v377_v9, %v376_v0  ;;  %v333_v28 = vadd.f32 %v332_v11, %v331_v1  ;;  %v339_v31 = vrot.slane %v338_v12, 1 }
  0x4b   :  { %v346_v32 = vrot.slane %v345_v13, 1  ;;  %v352_v33 = vadd.f32 %v351_v14, %v350_v4  ;;  %v361_v35 = vadd.f32 %v360_v17, %v359_v5  ;;  %v366_v36 = vadd.f32 %v365_v20, %v364_v6 }
  0x4c   :  { %v373_v38 = vadd.f32 %v372_v21, %v371_v7  ;;  %v379_v39 = vrot.slane %v378_v26, 2  ;;  %v340_v40 = vadd.f32 %v339_v31, %v338_v12  ;;  %v113_v43 = vmul.f32 %v661_v10, %v890_v23 }
  0x4d   :  { %v347_v41 = vadd.f32 %v346_v32, %v345_v13  ;;  %v353_v42 = vrot.slane %v352_v33, 1  ;;  %v367_v44 = vrot.slane %v366_v36, 1  ;;  %v114_v47 = vmul.f32 %v663_v16, %v897_v27 }
  0x4e   :  { %v374_v45 = vrot.slane %v373_v38, 1  ;;  %v380_v46 = vadd.f32 %v379_v39, %v378_v26  ;;  %v391_v49 = vcombine.low %v333_v28, %v340_v40  ;;  %v120_v50 = vcombine.high %v113_v43, %v113_v43 }
  0x4f   :  { %v354_v48 = vadd.f32 %v353_v42, %v352_v33  ;;  %v127_v51 = vrot.slane %v113_v43, %v879_v8  ;;  %v368_v52 = vadd.f32 %v367_v44, %v366_v36  ;;  %v137_v55 = vcombine.high %v114_v47, %v114_v47 }
  0x50   :  { %v375_v53 = vadd.f32 %v374_v45, %v373_v38  ;;  %v381_v54 = vrot.slane %v380_v46, 1  ;;  %v401_v57 = vrot.slane %v391_v49, %v892_v24  ;;  %v134_v58 = vrot.slane %v120_v50, %v879_v8 }
  0x51   :  { %v392_v56 = vcombine.low %v347_v41, %v354_v48  ;;  %v135_v23 = vcombine.high %v127_v51, %v127_v51  ;;  %v393_v60 = vcombine.low %v361_v35, %v368_v52  ;;  %v144_v61 = vrot.slane %v114_v47, %v879_v8 }
  0x52   :  { %v382_v59 = vadd.f32 %v381_v54, %v380_v46  ;;  %v935_v27 = vrot.slane %v137_v55, %v879_v8  ;;  %v136_v63 = vcombine.high %v134_v58, %v134_v58  ;;  %v163_v0 = vsel %vm162_vm0, %v127_v51, 0.0 }
  0x53   :  { %v408_v62 = vrot.slane %v392_v56, %v892_v24  ;;  %v170_v1 = vsel %vm162_vm0, %v135_v23, 0.0  ;;  %v415_v3 = vrot.slane %v393_v60, %v892_v24  ;;  %v152_v4 = vcombine.high %v144_v61, %v144_v61  ;;  %v955_v56 = vld [vmem:[#allocation8] ss:$8 sm:$0xf] }
  0x54   :  { %v394_v2 = vcombine.low %v375_v53, %v382_v59  ;;  %v153_v5 = vcombine.high %v935_v27, %v935_v27  ;;  %v164_v7 = vrot.slane %v163_v0, 4  ;;  %v171_v9 = vrot.slane %v170_v1, 4  ;;  %v957_v59 = vld [vmem:[#allocation8] ss:$8 sm:$0xf0] }
  0x55   :  { %v423_v6 = vcombine.low %v401_v57, %v408_v62  ;;  %v177_v10 = vsel %vm162_vm0, %v134_v58, 0.0  ;;  %v184_v13 = vsel %vm162_vm0, %v136_v63, 0.0  ;;  %v191_v14 = vsel %vm162_vm0, %v144_v61, 0.0 }
  0x56   :  { %v422_v11 = vrot.slane %v394_v2, %v892_v24  ;;  %v178_v12 = vrot.slane %v177_v10, 4  ;;  %v165_v17 = vadd.f32 %v164_v7, %v163_v0  ;;  %v172_v20 = vadd.f32 %v171_v9, %v170_v1 }
  0x57   :  { %v431_v16 = vrot.slane %v423_v6, %v892_v24  ;;  %v185_v21 = vrot.slane %v184_v13, 4  ;;  %v192_v31 = vrot.slane %v191_v14, 4  ;;  %v198_v32 = vsel %vm162_vm0, %v152_v4, 0.0 }
  0x58   :  { %v424_v26 = vcombine.low %v415_v3, %v422_v11  ;;  %v179_v28 = vadd.f32 %v178_v12, %v177_v10  ;;  %v166_v33 = vrot.slane %v165_v17, 2  ;;  %v173_v35 = vrot.slane %v172_v20, 2 }
  0x59   :  { %v186_v36 = vadd.f32 %v185_v21, %v184_v13  ;;  %v199_v38 = vrot.slane %v198_v32, 4  ;;  %v193_v41 = vadd.f32 %v192_v31, %v191_v14  ;;  %v205_v42 = vsel %vm162_vm0, %v935_v27, 0.0 }
  0x5a   :  { %v438_v39 = vrot.slane %v424_v26, %v892_v24  ;;  %v180_v40 = vrot.slane %v179_v28, 2  ;;  %v167_v43 = vadd.f32 %v166_v33, %v165_v17  ;;  %v174_v44 = vadd.f32 %v173_v35, %v172_v20 }
  0x5b   :  { %v187_v45 = vrot.slane %v186_v36, 2  ;;  %v200_v46 = vadd.f32 %v199_v38, %v198_v32  ;;  %v194_v49 = vrot.slane %v193_v41, 2  ;;  %v206_v50 = vrot.slane %v205_v42, 4 }
  0x5c   :  { %v439_v47 = vcombine.low %v431_v16, %v438_v39  ;;  %v181_v48 = vadd.f32 %v180_v40, %v179_v28  ;;  %v168_v51 = vrot.slane %v167_v43, 1  ;;  %v175_v52 = vrot.slane %v174_v44, 1 }
  0x5d   :  { %v188_v53 = vadd.f32 %v187_v45, %v186_v36  ;;  %v201_v54 = vrot.slane %v200_v46, 2  ;;  %v195_v58 = vadd.f32 %v194_v49, %v193_v41  ;;  %v207_v23 = vadd.f32 %v206_v50, %v205_v42 }
  0x5e   :  { %v441_v55 = vadd.f32 %v439_v47, %v282_v25  ;;  %v182_v57 = vrot.slane %v181_v48, 1  ;;  %v169_v60 = vadd.f32 %v168_v51, %v167_v43  ;;  %v176_v61 = vadd.f32 %v175_v52, %v174_v44 }
  0x5f   :  { %v189_v27 = vrot.slane %v188_v53, 1  ;;  %v202_v62 = vadd.f32 %v201_v54, %v200_v46  ;;  %v196_v0 = vrot.slane %v195_v58, 1  ;;  %v208_v1 = vrot.slane %v207_v23, 2 }
  0x60   :  { %442 = vst [vmem:[#allocation9] ss:$8 sm:$0xf] %v441_v55  ;;  %443 = vst [vmem:[#allocation9] ss:$8 sm:$0xf0] %v441_v55  ;;  %v183_v63 = vadd.f32 %v182_v57, %v181_v48  ;;  %v227_v3 = vcombine.low %v169_v60, %v176_v61 }
  0x61   :  { %v212_v15 = vsel %vm162_vm0, %v153_v5, 0.0  ;;  %v190_v18 = vadd.f32 %v189_v27, %v188_v53  ;;  %v203_v25 = vrot.slane %v202_v62, 1 }
  0x62   :  { %v213_v2 = vrot.slane %v212_v15, 4 }
  0x63   :  { %741 = shalt.err (!%p738_p0)
}
  0x64   :  { %s742_s6 = scalar_lea.hbm %s1039_s4, 1024 }
  0x65   :  { %p743_p1 = scmp.ne.s32.totalorder %s1039_s4, %s742_s6  ;;  %p746_p2 = scmp.lt.u32.totalorder %s742_s6, %s1039_s4 }
  0x67   :  { %p748_p3 = pnand %p746_p2, %p743_p1 }
  0x69   :  { %751 = shalt.err (!%p748_p3)
}
  0x6a   :  { %627 = dma.vmem_to_hbm [thread:$0]  %s625_s27, 1024, %s1039_s4, [#allocation10]   ;;  %v117_v4 = vor.u32 %v957_v59, %v955_v56  ;;  %v197_v5 = vadd.f32 %v196_v0, %v195_v58  ;;  %v209_v6 = vadd.f32 %v208_v1, %v207_v23  ;;  %v465_v7 = vcombine.high %v900_v29, %v900_v29 }
  0x6b   :  { %v204_v9 = vadd.f32 %v203_v25, %v202_v62  ;;  %v214_v10 = vadd.f32 %v213_v2, %v212_v15  ;;  %v228_v11 = vcombine.low %v183_v63, %v190_v18  ;;  %v237_v12 = vrot.slane %v227_v3, %v892_v24  ;;  %s811_s4 = smov [#allocation8]  }
  0x6c   :  { %v210_v13 = vrot.slane %v209_v6, 1  ;;  %v480_v14 = vrot.slane %v466_v30, %v879_v8  ;;  %v481_v16 = vcombine.high %v916_v37, %v916_v37  ;;  %v491_v17 = vsel %vm162_vm0, %v888_v22, 0.0  ;;  %s614_s13 = sshll.u32 %s811_s4, 4  ;;  %s615_s13 = int_to_ptr.vmem [resolvable:$true] %s614_s13 }
  0x6d   :  { %v215_v20 = vrot.slane %v214_v10, 2  ;;  %v229_v21 = vcombine.low %v197_v5, %v204_v9  ;;  %v244_v26 = vrot.slane %v228_v11, %v892_v24  ;;  %v492_v28 = vrot.slane %v491_v17, 4  ;;  %s752_s14 = scalar_lea.vmem %s615_s13, 1024  ;;  %p757_p5 = scmp.lt.s32.totalorder %s615_s13, %s615_s13 }
  0x6e   :  { %v211_v31 = vadd.f32 %v210_v13, %v209_v6  ;;  %v482_v32 = vcombine.high %v480_v14, %v480_v14  ;;  %v498_v33 = vsel %vm162_vm0, %v464_v34, 0.0  ;;  %v505_v8 = vsel %vm162_vm0, %v900_v29, 0.0  ;;  %p753_p4 = scmp.ne.s32.totalorder %s615_s13, %s752_s14  ;;  %p758_p6 = scmp.lt.s32.totalorder %s752_s14, %s752_s14 }
  0x6f   :  { %v216_v19 = vadd.f32 %v215_v20, %v214_v10  ;;  %v251_v30 = vrot.slane %v229_v21, %v892_v24  ;;  %v259_v35 = vcombine.low %v237_v12, %v244_v26  ;;  %v493_v36 = vadd.f32 %v492_v28, %v491_v17 }
  0x70   :  { %v499_v38 = vrot.slane %v498_v33, 4  ;;  %v506_v39 = vrot.slane %v505_v8, 4  ;;  %v512_v40 = vsel %vm162_vm0, %v465_v7, 0.0  ;;  %v519_v41 = vsel %vm162_vm0, %v916_v37, 0.0  ;;  %p759_p7 = por %p758_p6, %p757_p5 }
  0x71   :  { %v217_v42 = vrot.slane %v216_v19, 1  ;;  %v267_v22 = vrot.slane %v259_v35, %v892_v24  ;;  %v494_v43 = vrot.slane %v493_v36, 2  ;;  %v513_v34 = vrot.slane %v512_v40, 4 }
  0x72   :  { %v500_v44 = vadd.f32 %v499_v38, %v498_v33  ;;  %v507_v45 = vadd.f32 %v506_v39, %v505_v8  ;;  %v520_v29 = vrot.slane %v519_v41, 4  ;;  %v526_v46 = vsel %vm162_vm0, %v481_v16, 0.0  ;;  %p760_p8 = pnand %p759_p7, %p753_p4 }
  0x73   :  { %v218_v47 = vadd.f32 %v217_v42, %v216_v19  ;;  %v495_v48 = vadd.f32 %v494_v43, %v493_v36  ;;  %v514_v49 = vadd.f32 %v513_v34, %v512_v40  ;;  %v527_v50 = vrot.slane %v526_v46, 4 }
  0x74   :  { %v501_v51 = vrot.slane %v500_v44, 2  ;;  %v508_v52 = vrot.slane %v507_v45, 2  ;;  %v521_v53 = vadd.f32 %v520_v29, %v519_v41  ;;  %v533_v54 = vsel %vm162_vm0, %v480_v14, 0.0 }
  0x75   :  { %v230_v37 = vcombine.low %v211_v31, %v218_v47  ;;  %v496_v55 = vrot.slane %v495_v48, 1  ;;  %v515_v57 = vrot.slane %v514_v49, 2  ;;  %v528_v58 = vadd.f32 %v527_v50, %v526_v46 }
  0x76   :  { %v502_v23 = vadd.f32 %v501_v51, %v500_v44  ;;  %v509_v60 = vadd.f32 %v508_v52, %v507_v45  ;;  %v522_v61 = vrot.slane %v521_v53, 2  ;;  %v534_v27 = vrot.slane %v533_v54, 4 }
  0x77   :  { %v258_v62 = vrot.slane %v230_v37, %v892_v24  ;;  %v497_v63 = vadd.f32 %v496_v55, %v495_v48  ;;  %v516_v0 = vadd.f32 %v515_v57, %v514_v49  ;;  %v529_v1 = vrot.slane %v528_v58, 2 }
  0x78   :  { %v503_v15 = vrot.slane %v502_v23, 1  ;;  %v510_v18 = vrot.slane %v509_v60, 1  ;;  %v523_v25 = vadd.f32 %v522_v61, %v521_v53  ;;  %v535_v2 = vadd.f32 %v534_v27, %v533_v54 }
  0x79   :  { %v260_v3 = vcombine.low %v251_v30, %v258_v62  ;;  %v517_v5 = vrot.slane %v516_v0, 1  ;;  %v530_v6 = vadd.f32 %v529_v1, %v528_v58  ;;  %v540_v7 = vsel %vm162_vm0, %v482_v32, 0.0 }
  0x7a   :  { %v504_v9 = vadd.f32 %v503_v15, %v502_v23  ;;  %v511_v10 = vadd.f32 %v510_v18, %v509_v60  ;;  %v524_v11 = vrot.slane %v523_v25, 1  ;;  %v536_v12 = vrot.slane %v535_v2, 2 }
  0x7b   :  { %v274_v13 = vrot.slane %v260_v3, %v892_v24  ;;  %v518_v14 = vadd.f32 %v517_v5, %v516_v0  ;;  %v531_v16 = vrot.slane %v530_v6, 1  ;;  %v541_v17 = vrot.slane %v540_v7, 4 }
  0x7c   :  { %v537_v20 = vadd.f32 %v536_v12, %v535_v2  ;;  %v525_v28 = vadd.f32 %v524_v11, %v523_v25  ;;  %v555_v33 = vcombine.low %v497_v63, %v504_v9 }
  0x7d   :  { %v275_v21 = vcombine.low %v267_v22, %v274_v13  ;;  %v542_v26 = vadd.f32 %v541_v17, %v540_v7  ;;  %v532_v31 = vadd.f32 %v531_v16, %v530_v6  ;;  %v556_v30 = vcombine.low %v511_v10, %v518_v14 }
  0x7e   :  { %v538_v8 = vrot.slane %v537_v20, 1  ;;  %v565_v36 = vrot.slane %v555_v33, %v892_v24 }
  0x7f   :  { %v277_v32 = vadd.f32 %v275_v21, %v117_v4  ;;  %v543_v19 = vrot.slane %v542_v26, 2 }
  0x81   :  { %278 = vst [vmem:[#allocation8] ss:$8 sm:$0xf] %v277_v32  ;;  %279 = vst [vmem:[#allocation8] ss:$8 sm:$0xf0] %v277_v32  ;;  %v544_v35 = vadd.f32 %v543_v19, %v542_v26 }
  0x82   :  { %763 = shalt.err (!%p760_p8)
}
  0x83   :  { %s764_s16 = scalar_lea.hbm %s1038_s3, 1024 }
  0x84   :  { %p765_p9 = scmp.ne.s32.totalorder %s1038_s3, %s764_s16  ;;  %p768_p10 = scmp.lt.u32.totalorder %s764_s16, %s1038_s3 }
  0x86   :  { %p770_p11 = pnand %p768_p10, %p765_p9 }
  0x88   :  { %773 = shalt.err (!%p770_p11)
}
  0x89   :  { %617 = dma.vmem_to_hbm [thread:$0]  %s615_s13, 1024, %s1038_s3, [#allocation4]   ;;  %v539_v56 = vadd.f32 %v538_v8, %v537_v20  ;;  %v545_v59 = vrot.slane %v544_v35, 1  ;;  %v557_v4 = vcombine.low %v525_v28, %v532_v31  ;;  %v572_v38 = vrot.slane %v556_v30, %v892_v24  ;;  %v444_v43 = vld [vmem:[#allocation11] ss:$8 sm:$0xf] }
  0x8a   :  { %v445_v34 = vld [vmem:[#allocation11] ss:$8 sm:$0xf0]  ;;  %s812_s3 = smov [#allocation11]  }
  0x8b   :  { %v546_v39 = vadd.f32 %v545_v59, %v544_v35  ;;  %v579_v41 = vrot.slane %v557_v4, %v892_v24  ;;  %v587_v42 = vcombine.low %v565_v36, %v572_v38  ;;  %v446_v29 = vor.u32 %v445_v34, %v444_v43  ;;  %s634_s24 = sshll.u32 %s812_s3, 4  ;;  %s635_s24 = int_to_ptr.vmem [resolvable:$true] %s634_s24 }
  0x8c   :  { %s774_s25 = scalar_lea.vmem %s635_s24, 1024  ;;  %p779_p13 = scmp.lt.s32.totalorder %s635_s24, %s635_s24 }
  0x8d   :  { %v558_v40 = vcombine.low %v539_v56, %v546_v39  ;;  %v595_v45 = vrot.slane %v587_v42, %v892_v24  ;;  %p775_p12 = scmp.ne.s32.totalorder %s635_s24, %s774_s25  ;;  %p780_p0 = scmp.lt.s32.totalorder %s774_s25, %s774_s25 }
  0x8f   :  { %v586_v22 = vrot.slane %v558_v40, %v892_v24  ;;  %p781_p1 = por %p780_p0, %p779_p13 }
  0x91   :  { %v588_v44 = vcombine.low %v579_v41, %v586_v22  ;;  %p782_p2 = pnand %p781_p1, %p775_p12 }
  0x93   :  { %v602_v46 = vrot.slane %v588_v44, %v892_v24 }
  0x95   :  { %v603_v47 = vcombine.low %v595_v45, %v602_v46 }
  0x97   :  { %v605_v48 = vadd.f32 %v603_v47, %v446_v29 }
  0x99   :  { %606 = vst [vmem:[#allocation11] ss:$8 sm:$0xf] %v605_v48  ;;  %607 = vst [vmem:[#allocation11] ss:$8 sm:$0xf0] %v605_v48 }
  0x9a   :  { %785 = shalt.err (!%p782_p2)
}
  0x9b   :  { %s786_s21 = scalar_lea.hbm %s1040_s5, 1024 }
  0x9c   :  { %p787_p3 = scmp.ne.s32.totalorder %s1040_s5, %s786_s21  ;;  %p790_p4 = scmp.lt.u32.totalorder %s786_s21, %s1040_s5 }
  0x9e   :  { %p792_p5 = pnand %p790_p4, %p787_p3 }
  0xa0   :  { %795 = shalt.err (!%p792_p5)
}
  0xa1   :  { %637 = dma.vmem_to_hbm [thread:$0]  %s635_s24, 1024, %s1040_s5, [#allocation10]  }
  0xa2   :  { %800 = dma.done.wait [#allocation4], 1024  }
  0xa3   :  { %801 = vsyncadd [#allocation4], 4294966272 }
  0xa4   :  { %802 = dma.done.wait [#allocation10], 2048  }
  0xa5   :  { %803 = vsyncadd [#allocation10], 4294965248 }
  0xa6   :  { %647 = vsyncpa [#allocation3], 1 }
  0xa7   :  { %648 = vsyncpa [#allocation6], 1 }
  0xa8   :  { %649 = vsyncpa [#allocation4], 1 }
  0xa9   :  { %650 = vsyncpa [#allocation10], 1 }

</bundles_post_ra>
